<compile_context>
chip_gen: v7x
topology: tpu7x:2x2x1
jax: 0.10.0
libtpu: 0.0.40
codegen_flags: <defaults>
</compile_context>

<pallas_src>
import functools

import jax
import jax.numpy as jnp
from jax import lax
from jax.experimental import pallas as pl
from jax.experimental.pallas import tpu as pltpu


def _round_up(x, m):
    return (x + m - 1) // m * m


def _intermediate_kernel(x_ref, w_ref, b_ref, o_ref):
    """One (tm, tn) output tile; single full-K matmul + fused bias + exact GELU."""
    # bf16 operands, f32 accumulation on the MXU.
    acc = jnp.dot(x_ref[...], w_ref[...], preferred_element_type=jnp.float32)
    y = acc + b_ref[...].astype(jnp.float32)
    # exact (erf-based) GELU, matching HF/mindnlp ACT2FN["gelu"]
    inv_sqrt2 = jnp.float32(0.7071067811865476)
    y = 0.5 * y * (1.0 + lax.erf(y * inv_sqrt2))
    o_ref[...] = y.astype(o_ref.dtype)


@functools.partial(jax.jit, static_argnames=("tm", "tn"))
def bert_generation_intermediate(hidden_states, weight, bias, *, tm=256, tn=512):
    """hidden_states: [B, S, H]; weight: [H, I] (= torch weight.T); bias: [I] -> [B, S, I]."""
    B, S, H = hidden_states.shape
    Hw, I = weight.shape
    assert Hw == H, "weight must be [hidden, intermediate]"
    M = B * S

    # Adaptive tiles: shrink for small shapes, pad up for non-divisible shapes.
    tm_eff = min(tm, _round_up(M, 8))        # sublane-aligned
    tn_eff = min(tn, _round_up(I, 128))      # lane-aligned (lane-dense stores)
    M_pad = _round_up(M, tm_eff)
    I_pad = _round_up(I, tn_eff)

    x2d = hidden_states.reshape(M, H)
    if M_pad != M:
        x2d = jnp.pad(x2d, ((0, M_pad - M), (0, 0)))
    w2d = weight
    b2d = bias.reshape(1, I)
    if I_pad != I:
        w2d = jnp.pad(w2d, ((0, 0), (0, I_pad - I)))
        b2d = jnp.pad(b2d, ((0, 0), (0, I_pad - I)))

    # bf16 MXU inputs (full-rate MXU on v5e/v6e/v7x, half the HBM/VMEM bytes);
    # bias stays f32, epilogue runs in f32.
    x_bf = x2d.astype(jnp.bfloat16)
    w_bf = w2d.astype(jnp.bfloat16)
    b_f32 = b2d.astype(jnp.float32)

    out_dtype = hidden_states.dtype
    out_bytes = jnp.dtype(out_dtype).itemsize

    # Double-buffered inputs + output footprint; keep under v7x's 64 MiB VMEM.
    step_bytes = (
        2 * tm_eff * H * 2          # x tile (bf16), double-buffered
        + 2 * H * tn_eff * 2        # W tile (bf16), double-buffered
        + 2 * 1 * tn_eff * 4        # bias tile
        + 2 * tm_eff * tn_eff * out_bytes
    )
    vmem_limit = int(min(64 * 1024 * 1024, max(32 * 1024 * 1024, 2 * step_bytes)))

    # Grid: (N tiles, M tiles) with M innermost -> W block index constant across
    # consecutive steps, so the weight tile is NOT re-DMA'd for every row tile.
    grid = (I_pad // tn_eff, M_pad // tm_eff)

    out2d = pl.pallas_call(
        _intermediate_kernel,
        out_shape=jax.ShapeDtypeStruct((M_pad, I_pad), out_dtype),
        grid_spec=pltpu.PrefetchScalarGridSpec(
            num_scalar_prefetch=0,
            grid=grid,
            in_specs=[
                pl.BlockSpec((tm_eff, H), lambda j, i: (i, 0)),    # x, full K
                pl.BlockSpec((H, tn_eff), lambda j, i: (0, j)),    # W, full K
                pl.BlockSpec((1, tn_eff), lambda j, i: (0, j)),    # bias
            ],
            out_specs=pl.BlockSpec((tm_eff, tn_eff), lambda j, i: (i, j)),
        ),
        compiler_params=pltpu.CompilerParams(
            dimension_semantics=("parallel", "parallel"),
            vmem_limit_bytes=vmem_limit,
        ),
    )(x_bf, w_bf, b_f32)

    if M_pad != M or I_pad != I:
        out2d = out2d[:M, :I]
    return out2d.reshape(B, S, I)


def _reference(hidden_states, weight, bias):
    return jax.nn.gelu(hidden_states @ weight + bias, approximate=False)


if __name__ == "__main__":
    key = jax.random.PRNGKey(0)

    # Case 1: small BertGeneration-like config (tile-aligned dims).
    batch, seq, hidden_size, intermediate_size = 2, 8, 128, 512
    k1, k2, k3, key = jax.random.split(key, 4)
    hs = jax.random.normal(k1, (batch, seq, hidden_size), dtype=jnp.float32)
    w = jax.random.normal(k2, (hidden_size, intermediate_size), dtype=jnp.float32) * 0.02
    b = jax.random.normal(k3, (intermediate_size,), dtype=jnp.float32) * 0.02

    out = jax.block_until_ready(bert_generation_intermediate(hs, w, b))
    ref = _reference(hs, w, b)
    assert out.shape == (batch, seq, intermediate_size)
    # bf16 MXU operands (f32 accumulation) -> slightly looser tolerance vs f32 ref.
    assert jnp.allclose(out, ref, atol=2e-2, rtol=2e-2), float(jnp.max(jnp.abs(out - ref)))

    # Case 2: odd, non-tile-aligned dims (exercises padding / adaptive tiles).
    batch2, seq2, hidden2, inter2 = 2, 7, 96, 384
    k1, k2, k3, key = jax.random.split(key, 4)
    hs2 = jax.random.normal(k1, (batch2, seq2, hidden2), dtype=jnp.float32)
    w2 = jax.random.normal(k2, (hidden2, inter2), dtype=jnp.float32) * 0.02
    b2 = jax.random.normal(k3, (inter2,), dtype=jnp.float32) * 0.02

    out2 = jax.block_until_ready(bert_generation_intermediate(hs2, w2, b2))
    ref2 = _reference(hs2, w2, b2)
    assert out2.shape == (batch2, seq2, inter2)
    assert jnp.allclose(out2, ref2, atol=2e-2, rtol=2e-2), float(jnp.max(jnp.abs(out2 - ref2)))

    print("KERNEL_OK")
</pallas_src>

<mosaic_0001>
module attributes {stable_mosaic.version = 11 : i64} {
  func.func @_intermediate_kernel(%arg0: i32, %arg1: i32, %arg2: memref<16x128xbf16, #tpu.memory_space<vmem>>, %arg3: memref<128x512xbf16, #tpu.memory_space<vmem>>, %arg4: memref<1x512xf32, #tpu.memory_space<vmem>>, %arg5: memref<16x512xf32, #tpu.memory_space<vmem>>) attributes {dimension_semantics = [#tpu.dimension_semantics<parallel>, #tpu.dimension_semantics<parallel>], iteration_bounds = array<i64: 1, 1>, scalar_prefetch = 0 : i64, scratch_operands = 0 : i64, tpu.core_type = #tpu.core_type<tc>, window_params = [{transform_indices = @transform_0, window_bounds = array<i64: 16, 128>}, {transform_indices = @transform_1, window_bounds = array<i64: 128, 512>}, {transform_indices = @transform_2, window_bounds = array<i64: 1, 512>}, {transform_indices = @transform_3, window_bounds = array<i64: 16, 512>}]} {
    %c0 = arith.constant 0 : index
    %c0_0 = arith.constant 0 : index
    %0 = vector.load %arg2[%c0, %c0_0] : memref<16x128xbf16, #tpu.memory_space<vmem>>, vector<16x128xbf16>
    %c0_1 = arith.constant 0 : index
    %c0_2 = arith.constant 0 : index
    %1 = vector.load %arg3[%c0_1, %c0_2] : memref<128x512xbf16, #tpu.memory_space<vmem>>, vector<128x512xbf16>
    %cst = arith.constant dense<0.000000e+00> : vector<16x512xf32>
    %2 = tpu.matmul %0, %1, %cst {dimension_numbers = #tpu.dot_dimension_numbers<[1], [0], [0], [1], [0, 0, 1, 1], [], []>} : vector<16x128xbf16>, vector<128x512xbf16>, vector<16x512xf32> -> vector<16x512xf32>
    %c0_3 = arith.constant 0 : index
    %c0_4 = arith.constant 0 : index
    %3 = vector.load %arg4[%c0_3, %c0_4] : memref<1x512xf32, #tpu.memory_space<vmem>>, vector<1x512xf32>
    %4 = vector.broadcast %3 : vector<1x512xf32> to vector<16x512xf32>
    %5 = arith.addf %2, %4 : vector<16x512xf32>
    %cst_5 = arith.constant 5.000000e-01 : f32
    %6 = vector.broadcast %cst_5 : f32 to vector<16x512xf32>
    %7 = arith.mulf %6, %5 : vector<16x512xf32>
    %cst_6 = arith.constant 0.707106769 : f32
    %8 = vector.broadcast %cst_6 : f32 to vector<16x512xf32>
    %9 = arith.mulf %5, %8 : vector<16x512xf32>
    %10 = math.erf %9 : vector<16x512xf32>
    %cst_7 = arith.constant 1.000000e+00 : f32
    %11 = vector.broadcast %cst_7 : f32 to vector<16x512xf32>
    %12 = arith.addf %11, %10 : vector<16x512xf32>
    %13 = arith.mulf %7, %12 : vector<16x512xf32>
    %c0_8 = arith.constant 0 : index
    %c0_9 = arith.constant 0 : index
    %14 = vector.load %arg5[%c0_8, %c0_9] : memref<16x512xf32, #tpu.memory_space<vmem>>, vector<16x512xf32>
    tpu.vector_store %arg5[%c0_8, %c0_9], %13 {strides = array<i32>} : memref<16x512xf32, #tpu.memory_space<vmem>>, vector<16x512xf32>,
    return
  }
  func.func @transform_0(%arg0: i32, %arg1: i32) -> (i32, i32) {
    %c0_i32 = arith.constant 0 : i32
    %c0_i32_0 = arith.constant 0 : i32
    return %arg1, %c0_i32 : i32, i32
  }
  func.func @transform_1(%arg0: i32, %arg1: i32) -> (i32, i32) {
    %c0_i32 = arith.constant 0 : i32
    %c0_i32_0 = arith.constant 0 : i32
    return %c0_i32, %arg0 : i32, i32
  }
  func.func @transform_2(%arg0: i32, %arg1: i32) -> (i32, i32) {
    %c0_i32 = arith.constant 0 : i32
    %c0_i32_0 = arith.constant 0 : i32
    return %c0_i32, %arg0 : i32, i32
  }
  func.func @transform_3(%arg0: i32, %arg1: i32) -> (i32, i32) {
    %c0_i32 = arith.constant 0 : i32
    return %arg1, %arg0 : i32, i32
  }
}

</mosaic_0001>

<bundles_post_ra>
// kernel: bert_generation_intermediate.1
= control target key start
LH: loop header
LB: loop body
LE: loop exit
PB: predicated region body
PF: predicated region fallthrough
CT: control target
= control target key end

     0   :  { %v514_v2 = vmov 0   ;;  %s652_s0 = inlined_call_operand.vmem [shape: bf16[16,128], index: 0, kind: input, shape index: {}]   ;;  %s653_s1 = inlined_call_operand.vmem [shape: bf16[128,512], index: 1, kind: input, shape index: {}]   ;;  %s654_s2 = inlined_call_operand.vmem [shape: f32[1,512], index: 2, kind: input, shape index: {}]   ;;  %s655_s3 = inlined_call_operand.hbm [shape: f32[16,512], index: 3, kind: output, shape index: {}]  }
   0x1   :  { %v425_v0 = vld [vmem:[%s653_s1 + $0x4] ss:$16 sps:$4 sm:$0xff]   ;;  %v427_v1 = vld [vmem:[%s653_s1 + $0xc] ss:$16 sps:$4 sm:$0xff]   ;;  %270 = vmatprep.mubr.bf16.mxu0 %v514_v2  ;;  %313 = vmatprep.mubr.bf16.mxu1 %v514_v2  ;;  %v429_v3 = vld [vmem:[%s653_s1] ss:$16 sps:$4 sm:$0xff]  }
   0x2   :  { %238 = vmatprep.subr.bf16.mxu0 %v425_v0  ;;  %v430_v4 = vld [vmem:[%s653_s1 + $0x8] ss:$16 sps:$4 sm:$0xff]   ;;  %281 = vmatprep.subr.bf16.mxu1 %v427_v1  ;;  %v431_v5 = vld [vmem:[%s653_s1 + $0x24] ss:$16 sps:$4 sm:$0xff]   ;;  %v433_v6 = vld [vmem:[%s653_s1 + $0x2c] ss:$16 sps:$4 sm:$0xff]  }
   0x3   :  { %239 = vmatpush1.bf16.msra.mxu0 %v429_v3  ;;  %282 = vmatpush1.bf16.msra.mxu1 %v430_v4  ;;  %v435_v7 = vld [vmem:[%s653_s1 + $0x20] ss:$16 sps:$4 sm:$0xff]   ;;  %v436_v8 = vld [vmem:[%s653_s1 + $0x28] ss:$16 sps:$4 sm:$0xff]   ;;  %v437_v9 = vld [vmem:[%s653_s1 + $0x44] ss:$16 sps:$4 sm:$0xff]  }
   0x4   :  { %240 = vmatprep.subr.bf16.mxu0 %v431_v5  ;;  %283 = vmatprep.subr.bf16.mxu1 %v433_v6  ;;  %v439_v10 = vld [vmem:[%s653_s1 + $0x4c] ss:$16 sps:$4 sm:$0xff]   ;;  %v441_v11 = vld [vmem:[%s653_s1 + $0x40] ss:$16 sps:$4 sm:$0xff]   ;;  %v442_v12 = vld [vmem:[%s653_s1 + $0x48] ss:$16 sps:$4 sm:$0xff]  }
   0x5   :  { %v443_v13 = vld [vmem:[%s653_s1 + $0x64] ss:$16 sps:$4 sm:$0xff]   ;;  %v445_v14 = vld [vmem:[%s653_s1 + $0x6c] ss:$16 sps:$4 sm:$0xff]   ;;  %v447_v15 = vld [vmem:[%s653_s1 + $0x60] ss:$16 sps:$4 sm:$0xff]  }
   0x6   :  { %v448_v16 = vld [vmem:[%s653_s1 + $0x68] ss:$16 sps:$4 sm:$0xff]   ;;  %v449_v17 = vld [vmem:[%s653_s1 + $0x84] ss:$16 sps:$4 sm:$0xff]   ;;  %v451_v18 = vld [vmem:[%s653_s1 + $0x8c] ss:$16 sps:$4 sm:$0xff]  }
   0x7   :  { %241 = vmatpush1.bf16.msra.mxu0 %v435_v7  ;;  %284 = vmatpush1.bf16.msra.mxu1 %v436_v8  ;;  %v453_v19 = vld [vmem:[%s653_s1 + $0x80] ss:$16 sps:$4 sm:$0xff]   ;;  %v454_v20 = vld [vmem:[%s653_s1 + $0x88] ss:$16 sps:$4 sm:$0xff]   ;;  %v455_v21 = vld [vmem:[%s653_s1 + $0xa4] ss:$16 sps:$4 sm:$0xff]  }
   0x8   :  { %242 = vmatprep.subr.bf16.mxu0 %v437_v9  ;;  %285 = vmatprep.subr.bf16.mxu1 %v439_v10  ;;  %v457_v22 = vld [vmem:[%s653_s1 + $0xac] ss:$16 sps:$4 sm:$0xff]   ;;  %v459_v23 = vld [vmem:[%s653_s1 + $0xa0] ss:$16 sps:$4 sm:$0xff]   ;;  %v460_v24 = vld [vmem:[%s653_s1 + $0xa8] ss:$16 sps:$4 sm:$0xff]  }
   0x9   :  { %v461_v25 = vld [vmem:[%s653_s1 + $0xc4] ss:$16 sps:$4 sm:$0xff]   ;;  %v463_v26 = vld [vmem:[%s653_s1 + $0xcc] ss:$16 sps:$4 sm:$0xff]  }
   0xb   :  { %243 = vmatpush1.bf16.msra.mxu0 %v441_v11  ;;  %286 = vmatpush1.bf16.msra.mxu1 %v442_v12 }
   0xc   :  { %244 = vmatprep.subr.bf16.mxu0 %v443_v13  ;;  %287 = vmatprep.subr.bf16.mxu1 %v445_v14 }
   0xf   :  { %245 = vmatpush1.bf16.msra.mxu0 %v447_v15  ;;  %288 = vmatpush1.bf16.msra.mxu1 %v448_v16 }
  0x10   :  { %246 = vmatprep.subr.bf16.mxu0 %v449_v17  ;;  %289 = vmatprep.subr.bf16.mxu1 %v451_v18 }
  0x13   :  { %247 = vmatpush1.bf16.msra.mxu0 %v453_v19  ;;  %290 = vmatpush1.bf16.msra.mxu1 %v454_v20 }
  0x14   :  { %248 = vmatprep.subr.bf16.mxu0 %v455_v21  ;;  %291 = vmatprep.subr.bf16.mxu1 %v457_v22 }
  0x15   :  { %8 = vsyncpa [#allocation3], 0  ;;  %v465_v27 = vld [vmem:[%s653_s1 + $0xc0] ss:$16 sps:$4 sm:$0xff]   ;;  %v466_v28 = vld [vmem:[%s653_s1 + $0xc8] ss:$16 sps:$4 sm:$0xff]   ;;  %v52_v34 = vlaneseq }
  0x16   :  { %v467_v29 = vld [vmem:[%s653_s1 + $0xe4] ss:$16 sps:$4 sm:$0xff]   ;;  %v469_v30 = vld [vmem:[%s653_s1 + $0xec] ss:$16 sps:$4 sm:$0xff]   ;;  %v471_v31 = vld [vmem:[%s653_s1 + $0xe0] ss:$16 sps:$4 sm:$0xff]  }
  0x17   :  { %249 = vmatpush1.bf16.msra.mxu0 %v459_v23  ;;  %292 = vmatpush1.bf16.msra.mxu1 %v460_v24  ;;  %v472_v32 = vld [vmem:[%s653_s1 + $0xe8] ss:$16 sps:$4 sm:$0xff]   ;;  %v473_v33 = vld [vmem:[%s652_s0] sm:$0xff]   ;;  %v53_v35 = vshrl.u32 %v52_v34, 7  ;;  %s515_s0 = smov [#allocation2]  }
  0x18   :  { %250 = vmatprep.subr.bf16.mxu0 %v461_v25  ;;  %293 = vmatprep.subr.bf16.mxu1 %v463_v26  ;;  %v50_v38 = vld [vmem:[%s654_s2] sm:$0xf]  ;;  %s377_s1 = sshll.u32 %s515_s0, 4  ;;  %s378_s1 = int_to_ptr.vmem [resolvable:$true] %s377_s1 }
  0x19   :  { %v54_v36 = vsub.s32 0, %v53_v35  ;;  %v62_v37 = vsub.s32 2, %v53_v35  ;;  %v58_v39 = vsub.s32 1, %v53_v35  ;;  %v66_v40 = vsub.s32 3, %v53_v35  ;;  %s490_s2 = scalar_lea.vmem %s378_s1, 1024  ;;  %p495_p1 = scmp.lt.s32.totalorder %s378_s1, %s378_s1 }
  0x1a   :  { %p491_p0 = scmp.ne.s32.totalorder %s378_s1, %s490_s2  ;;  %p496_p2 = scmp.lt.s32.totalorder %s490_s2, %s490_s2 }
  0x1b   :  { %251 = vmatpush1.bf16.msra.mxu0 %v465_v27  ;;  %294 = vmatpush1.bf16.msra.mxu1 %v466_v28  ;;  %v55_v41 = vrot.slane %v50_v38, %v54_v36  ;;  %v63_v42 = vrot.slane %v50_v38, %v62_v37  ;;  %v59_v43 = vrot.slane %v50_v38, %v58_v39 }
  0x1c   :  { %252 = vmatprep.subr.bf16.mxu0 %v467_v29  ;;  %295 = vmatprep.subr.bf16.mxu1 %v469_v30  ;;  %v67_v44 = vrot.slane %v50_v38, %v66_v40  ;;  %p497_p3 = por %p496_p2, %p495_p1 }
  0x1e   :  { %p498_p4 = pnand %p497_p3, %p491_p0 }
  0x1f   :  { %253 = vmatpush1.bf16.msra.mxu0 %v471_v31  ;;  %296 = vmatpush1.bf16.msra.mxu1 %v472_v32 }
  0x22   :  { %271 = vmatmul.mubr.bf16.vlgmr.msra.gmra.mrb[0].mxu0 %v473_v33  ;;  %314 = vmatmul.mubr.bf16.vlgmr.msra.gmra.mrb[0].mxu1 %v473_v33 }
  0xf5   :  { %v272_v45 = vpop.f32.mrb[0].mxu0  ;;  %v315_v46 = vpop.f32.mrb[0].mxu1 }
  0xf6   :  { %v273_v47 = vadd.f32 %v272_v45, %v55_v41  ;;  %v316_v48 = vadd.f32 %v315_v46, %v63_v42  ;;  %v274_v49 = vpop.f32.mrb[1].mxu0  ;;  %v317_v50 = vpop.f32.mrb[1].mxu1 }
  0xf7   :  { %v275_v51 = vadd.f32 %v274_v49, %v59_v43  ;;  %v318_v52 = vadd.f32 %v317_v50, %v67_v44  ;;  %v276_v53 = vpop.f32.mrb[2].mxu0  ;;  %v319_v54 = vpop.f32.mrb[2].mxu1 }
  0xf8   :  { %v332_v55 = vmul.f32 0.70710677, %v273_v47  ;;  %v334_v56 = vmul.f32 0.70710677, %v316_v48  ;;  %v277_v59 = vadd.f32 %v276_v53, %v55_v41  ;;  %v320_v60 = vadd.f32 %v319_v54, %v63_v42  ;;  %v278_v61 = vpop.f32.mrb[3].mxu0  ;;  %v321_v62 = vpop.f32.mrb[3].mxu1 }
  0xf9   :  { %v333_v57 = vmul.f32 0.70710677, %v275_v51  ;;  %v335_v58 = vmul.f32 0.70710677, %v318_v52  ;;  %v279_v63 = vadd.f32 %v278_v61, %v59_v43  ;;  %v322_v0 = vadd.f32 %v321_v62, %v67_v44 }
  0xfa   :  { %474 = verf.f32 %v332_v55  ;;  %v336_v1 = vmul.f32 0.70710677, %v277_v59  ;;  %v338_v2 = vmul.f32 0.70710677, %v320_v60  ;;  %v324_v7 = vmul.f32 0.5, %v273_v47 }
  0xfb   :  { %476 = verf.f32 %v334_v56  ;;  %v337_v3 = vmul.f32 0.70710677, %v279_v63  ;;  %v339_v4 = vmul.f32 0.70710677, %v322_v0  ;;  %v326_v10 = vmul.f32 0.5, %v316_v48 }
  0xfc   :  { %478 = verf.f32 %v333_v57  ;;  %v325_v14 = vmul.f32 0.5, %v275_v51  ;;  %v327_v18 = vmul.f32 0.5, %v318_v52  ;;  %v328_v22 = vmul.f32 0.5, %v277_v59 }
  0xfd   :  { %480 = verf.f32 %v335_v58  ;;  %v330_v26 = vmul.f32 0.5, %v320_v60  ;;  %v329_v30 = vmul.f32 0.5, %v279_v63  ;;  %v331_v33 = vmul.f32 0.5, %v322_v0 }
  0xfe   :  { %482 = verf.f32 %v336_v1 }
  0xff   :  { %484 = verf.f32 %v338_v2 }
 0x100   :  { %486 = verf.f32 %v337_v3 }
 0x101   :  { %488 = verf.f32 %v339_v4 }
 0x104   :  { %v475_v5 = vpop.eup %474 }
 0x105   :  { %v477_v6 = vpop.eup %476  ;;  %v348_v8 = vadd.f32 1.0, %v475_v5 }
 0x106   :  { %v479_v9 = vpop.eup %478  ;;  %v350_v11 = vadd.f32 1.0, %v477_v6 }
 0x107   :  { %v481_v12 = vpop.eup %480  ;;  %v356_v13 = vmul.f32 %v348_v8, %v324_v7  ;;  %v349_v15 = vadd.f32 1.0, %v479_v9 }
 0x108   :  { %v483_v16 = vpop.eup %482  ;;  %v358_v17 = vmul.f32 %v350_v11, %v326_v10  ;;  %v351_v19 = vadd.f32 1.0, %v481_v12 }
 0x109   :  { %v485_v20 = vpop.eup %484  ;;  %364 = vst [vmem:[#allocation2] sm:$0xff] %v356_v13  ;;  %v357_v21 = vmul.f32 %v349_v15, %v325_v14  ;;  %v352_v23 = vadd.f32 1.0, %v483_v16 }
 0x10a   :  { %v487_v24 = vpop.eup %486  ;;  %366 = vst [vmem:[#allocation2 + $0x10] sm:$0xff] %v358_v17  ;;  %v359_v25 = vmul.f32 %v351_v19, %v327_v18  ;;  %v354_v27 = vadd.f32 1.0, %v485_v20 }
 0x10b   :  { %v489_v28 = vpop.eup %488  ;;  %365 = vst [vmem:[#allocation2 + $0x8] sm:$0xff] %v357_v21  ;;  %v360_v29 = vmul.f32 %v352_v23, %v328_v22  ;;  %v353_v31 = vadd.f32 1.0, %v487_v24 }
 0x10c   :  { %367 = vst [vmem:[#allocation2 + $0x18] sm:$0xff] %v359_v25  ;;  %v362_v32 = vmul.f32 %v354_v27, %v330_v26  ;;  %v355_v34 = vadd.f32 1.0, %v489_v28 }
 0x10d   :  { %368 = vst [vmem:[#allocation2 + $0x20] sm:$0xff] %v360_v29  ;;  %v361_v35 = vmul.f32 %v353_v31, %v329_v30 }
 0x10e   :  { %370 = vst [vmem:[#allocation2 + $0x30] sm:$0xff] %v362_v32  ;;  %v363_v36 = vmul.f32 %v355_v34, %v331_v33 }
 0x10f   :  { %369 = vst [vmem:[#allocation2 + $0x28] sm:$0xff] %v361_v35 }
 0x110   :  { %371 = vst [vmem:[#allocation2 + $0x38] sm:$0xff] %v363_v36 }
 0x111   :  { %501 = shalt.err (!%p498_p4)
}
 0x112   :  { %s502_s28 = scalar_lea.hbm %s655_s3, 1024 }
 0x113   :  { %p503_p5 = scmp.ne.s32.totalorder %s655_s3, %s502_s28  ;;  %p506_p6 = scmp.lt.u32.totalorder %s502_s28, %s655_s3 }
 0x115   :  { %p508_p7 = pnand %p506_p6, %p503_p5 }
 0x117   :  { %511 = shalt.err (!%p508_p7)
}
 0x118   :  { %s516_s6 = smov 512   ;;  %s517_s7 = smov 32  }
 0x119   :  { %383 = dma.vmem_to_hbm [thread:$0]  %s378_s1, 1024, %s655_s3, [#allocation3], %s516_s6, %s516_s6, %s517_s7  }
 0x11a   :  { %512 = dma.done.wait [#allocation3], 1024  }
 0x11b   :  { %513 = vsyncadd [#allocation3], 4294966272 }
 0x11c   :  { %387 = vsyncpa [#allocation3], 1 }

</bundles_post_ra>
